<compile_context>
chip_gen: v5e
topology: v5e:2x2
jax: 0.10.0
libtpu: 0.0.40
codegen_flags: <defaults>
</compile_context>

<pallas_src>
import jax
import jax.numpy as jnp
from jax.experimental import pallas as pl
from jax.experimental.pallas import tpu as pltpu


def _prod(xs):
    out = 1
    for x in xs:
        out *= int(x)
    return out


def _sublane(dtype):
    # Native second-minor packing per dtype width: f32 -> 8, bf16 -> 16, i8 -> 32.
    return {4: 8, 2: 16, 1: 32}.get(jnp.dtype(dtype).itemsize, 8)


def _round_down(x, m):
    return (x // m) * m


def _vmem_budget():
    """(vmem_limit_bytes, per-output-tile byte budget), derived from the chip."""
    try:
        cap = int(pltpu.get_tpu_info().vmem_capacity_bytes)
    except Exception:
        cap = 64 << 20  # conservative fallback (v7x per-TC physical VMEM)
    # Leave headroom below physical capacity; 96 MiB is plenty for a memcpy and
    # keeps v5e/v6e (128 MiB) and v7x (64 MiB) on the same code path.
    vmem_limit = min((cap * 3) // 4, 96 << 20)
    # Double-buffered inputs + double-buffered output tile ~= 4x output tile
    # bytes; use /5 for extra headroom, and never exceed 16 MiB per tile.
    tile_budget = min(vmem_limit // 5, 16 << 20)
    return int(vmem_limit), int(tile_budget)


def _pick_tile(extent, bytes_per_unit, quantum, budget_bytes, min_steps=4):
    """Largest tile (multiple of `quantum`, or the full extent) fitting the byte
    budget, capped so the grid has >= `min_steps` steps when the extent allows
    (megacore sharding + pipelining), preferring tiles that divide `extent`."""
    if extent <= quantum:
        return extent
    tile = max(quantum, _round_down(budget_bytes // max(bytes_per_unit, 1), quantum))
    if extent >= min_steps * quantum:
        tile = min(tile, max(quantum, _round_down(extent // min_steps, quantum)))
    else:
        tile = min(tile, extent)
    # Prefer an even division to avoid a ragged (masked) final block.
    if tile < extent and extent % tile != 0:
        cand, lo = tile, max(quantum, tile // 2)
        while cand >= lo:
            if extent % cand == 0:
                tile = cand
                break
            cand -= quantum
    return tile


def _make_col_window_kernel(n_inputs, offsets, widths):
    """2D: copy each input tile into its static column window of the output tile."""
    def kernel(*refs):
        out_ref = refs[n_inputs]
        for in_ref, off, w in zip(refs[:n_inputs], offsets, widths):
            out_ref[:, off:off + w] = in_ref[...]
    return kernel


def _make_row_window_kernel(n_inputs, offsets, sizes):
    """2D: copy each input tile into its static row window of the output tile."""
    def kernel(*refs):
        out_ref = refs[n_inputs]
        for in_ref, off, s in zip(refs[:n_inputs], offsets, sizes):
            out_ref[off:off + s, :] = in_ref[...]
    return kernel


def _make_mid_window_kernel(n_inputs, offsets, sizes):
    """3D: copy each input tile into its static sublane-axis window of the output."""
    def kernel(*refs):
        out_ref = refs[n_inputs]
        for in_ref, off, s in zip(refs[:n_inputs], offsets, sizes):
            out_ref[:, off:off + s, :] = in_ref[...]
    return kernel


def pallas_cat(*args, dim: int, _tile_budget_bytes=None):
    """torch.cat(args, dim) equivalent, executed as a single tiled Pallas kernel."""
    n = len(args)
    assert n >= 1, "cat needs at least one tensor"
    ndim = args[0].ndim
    assert ndim >= 1, "cat does not support 0-d tensors"
    dim = dim % ndim

    # Type promotion (torch.cat promotes mixed dtypes).
    out_dtype = jnp.result_type(*[a.dtype for a in args])
    args = tuple(a.astype(out_dtype) for a in args)

    base = args[0].shape
    for a in args:
        assert a.ndim == ndim
        for d in range(ndim):
            if d != dim:
                assert a.shape[d] == base[d], "non-concat dims must match"

    all_sizes = [a.shape[dim] for a in args]
    out_shape = list(base)
    out_shape[dim] = sum(all_sizes)
    out_shape = tuple(out_shape)

    # Drop zero-size operands (legal for torch.cat; width-0 blocks are not).
    kept = [(a, s) for a, s in zip(args, all_sizes) if s > 0]
    if not kept:
        return jnp.zeros(out_shape, out_dtype)
    if len(kept) == 1:
        return kept[0][0].reshape(out_shape)
    args = [a for a, _ in kept]
    sizes = [s for _, s in kept]
    n = len(args)

    outer = _prod(base[:dim])
    inner = _prod(base[dim + 1:])
    S = sum(sizes)

    itemsize = jnp.dtype(out_dtype).itemsize
    sublane = _sublane(out_dtype)
    vmem_limit, tile_budget = _vmem_budget()
    if _tile_budget_bytes is not None:
        tile_budget = int(_tile_budget_bytes)

    cost = pl.CostEstimate(flops=0, transcendentals=0,
                           bytes_accessed=2 * outer * S * inner * itemsize)
    cparams = pltpu.CompilerParams(dimension_semantics=("parallel",),
                                   vmem_limit_bytes=vmem_limit)

    row_offsets = []
    off = 0
    for s in sizes:
        row_offsets.append(off)
        off += s

    if outer == 1:
        # dim-0 / leading-dim concat: the concat axis is the row axis, so tile
        # the trailing (lane) axis and write contiguous row windows per input.
        # TODO(synk): for enormous dim-0 concats the full concat extent still
        #             sits in each column tile; split rows per input if needed.
        flat = [a.reshape(s, inner) for a, s in zip(args, sizes)]
        tile_cols = _pick_tile(inner, S * itemsize, 128, tile_budget)
        grid = (pl.cdiv(inner, tile_cols),)
        out2d = pl.pallas_call(
            _make_row_window_kernel(n, row_offsets, sizes),
            out_shape=jax.ShapeDtypeStruct((S, inner), out_dtype),
            grid=grid,
            in_specs=[pl.BlockSpec((s, tile_cols), lambda c: (0, c)) for s in sizes],
            out_specs=pl.BlockSpec((S, tile_cols), lambda c: (0, c)),
            compiler_params=cparams,
            cost_estimate=cost,
        )(*flat)
        return out2d.reshape(out_shape)

    if inner % 128 == 0 or inner == 1:
        # Lane-dense 2D path: column offsets are multiples of `inner` (>= 128
        # when aligned) -> unmasked full-lane stores.  inner == 1 (last-dim
        # concat) reuses this path; stores are masked but the case is tiny.
        widths = [s * inner for s in sizes]
        col_offsets = [o * inner for o in row_offsets]
        total_w = S * inner
        flat = [a.reshape(outer, w) for a, w in zip(args, widths)]
        tile_rows = _pick_tile(outer, total_w * itemsize, sublane, tile_budget)
        grid = (pl.cdiv(outer, tile_rows),)
        out2d = pl.pallas_call(
            _make_col_window_kernel(n, col_offsets, widths),
            out_shape=jax.ShapeDtypeStruct((outer, total_w), out_dtype),
            grid=grid,
            in_specs=[pl.BlockSpec((tile_rows, w), lambda r: (r, 0)) for w in widths],
            out_specs=pl.BlockSpec((tile_rows, total_w), lambda r: (r, 0)),
            compiler_params=cparams,
            cost_estimate=cost,
        )(*flat)
        return out2d.reshape(out_shape)

    # Lane-misaligned middle concat: 3D blocks so concat offsets land on the
    # sublane axis while the lane axis keeps the full (unchanged) `inner` width.
    flat = [a.reshape(outer, s, inner) for a, s in zip(args, sizes)]
    tile_rows = _pick_tile(outer, S * inner * itemsize, sublane, tile_budget)
    grid = (pl.cdiv(outer, tile_rows),)
    out3d = pl.pallas_call(
        _make_mid_window_kernel(n, row_offsets, sizes),
        out_shape=jax.ShapeDtypeStruct((outer, S, inner), out_dtype),
        grid=grid,
        in_specs=[pl.BlockSpec((tile_rows, s, inner), lambda r: (r, 0, 0))
                  for s in sizes],
        out_specs=pl.BlockSpec((tile_rows, S, inner), lambda r: (r, 0, 0)),
        compiler_params=cparams,
        cost_estimate=cost,
    )(*flat)
    return out3d.reshape(out_shape)


if __name__ == "__main__":
    key = jax.random.PRNGKey(0)
    k1, k2, k3, k4, k5 = jax.random.split(key, 5)

    # 1) NCHW-style channel concat (dim=1): lane-aligned 2D fast path.
    x1 = jax.random.normal(k1, (2, 4, 16, 16), dtype=jnp.float32)
    x2 = jax.random.normal(k2, (2, 6, 16, 16), dtype=jnp.float32)
    x3 = jax.random.normal(k3, (2, 2, 16, 16), dtype=jnp.float32)
    out = jax.block_until_ready(pallas_cat(x1, x2, x3, dim=1))
    ref = jnp.concatenate([x1, x2, x3], axis=1)
    assert out.shape == (2, 12, 16, 16)
    assert jnp.array_equal(out, ref)

    # 2) Last-dim concat (inner == 1): degenerate 2D path, masked lane stores.
    out_last = jax.block_until_ready(pallas_cat(x1, x1, dim=-1))
    ref_last = jnp.concatenate([x1, x1], axis=-1)
    assert jnp.array_equal(out_last, ref_last)

    # 3) dim=0 concat (outer == 1): lane-tiled path, no whole-array VMEM residency.
    out_0 = jax.block_until_ready(pallas_cat(x1, x2[:, :4], dim=0))
    ref_0 = jnp.concatenate([x1, x2[:, :4]], axis=0)
    assert jnp.array_equal(out_0, ref_0)

    # 4) Lane-misaligned middle concat (inner=16): 3D sublane-window path.
    y1 = jax.random.normal(k4, (2, 4, 3, 16), dtype=jnp.float32)
    y2 = jax.random.normal(k5, (2, 4, 5, 16), dtype=jnp.float32)
    out_mid = jax.block_until_ready(pallas_cat(y1, y2, dim=2))
    ref_mid = jnp.concatenate([y1, y2], axis=2)
    assert jnp.array_equal(out_mid, ref_mid)

    # 5) Ragged row tiling (outer % tile_rows != 0), forced via a tiny budget:
    #    outer=20, tile_rows=8 -> grid of 3 with a padded/masked final block.
    a = jax.random.normal(k1, (20, 3, 128), dtype=jnp.float32)
    b = jax.random.normal(k2, (20, 5, 128), dtype=jnp.float32)
    out_rag = jax.block_until_ready(
        pallas_cat(a, b, dim=1, _tile_budget_bytes=8 * 8 * 128 * 4))
    ref_rag = jnp.concatenate([a, b], axis=1)
    assert jnp.array_equal(out_rag, ref_rag)

    # 6) bf16 channel concat (sublane packing = 16 path).
    xb1 = x1.astype(jnp.bfloat16)
    xb2 = x2.astype(jnp.bfloat16)
    out_bf = jax.block_until_ready(pallas_cat(xb1, xb2, dim=1))
    ref_bf = jnp.concatenate([xb1, xb2], axis=1)
    assert jnp.array_equal(out_bf, ref_bf)

    print("KERNEL_OK")
</pallas_src>

<mosaic_0001>
module attributes {stable_mosaic.version = 11 : i64} {
  func.func @kernel(%arg0: i32, %arg1: memref<2x1024xf32, #tpu.memory_space<vmem>>, %arg2: memref<2x1536xf32, #tpu.memory_space<vmem>>, %arg3: memref<2x512xf32, #tpu.memory_space<vmem>>, %arg4: memref<2x3072xf32, #tpu.memory_space<vmem>>) attributes {dimension_semantics = [#tpu.dimension_semantics<parallel>], iteration_bounds = array<i64: 1>, scalar_prefetch = 0 : i64, scratch_operands = 0 : i64, tpu.core_type = #tpu.core_type<tc>, window_params = [{transform_indices = @transform_0, window_bounds = array<i64: 2, 1024>}, {transform_indices = @transform_1, window_bounds = array<i64: 2, 1536>}, {transform_indices = @transform_2, window_bounds = array<i64: 2, 512>}, {transform_indices = @transform_3, window_bounds = array<i64: 2, 3072>}]} {
    %c0 = arith.constant 0 : index
    %c0_0 = arith.constant 0 : index
    %0 = vector.load %arg1[%c0, %c0_0] : memref<2x1024xf32, #tpu.memory_space<vmem>>, vector<2x1024xf32>
    %c0_1 = arith.constant 0 : index
    %c0_2 = arith.constant 0 : index
    %1 = vector.load %arg4[%c0_1, %c0_2] : memref<2x3072xf32, #tpu.memory_space<vmem>>, vector<2x1024xf32>
    tpu.vector_store %arg4[%c0_1, %c0_2], %0 {strides = array<i32>} : memref<2x3072xf32, #tpu.memory_space<vmem>>, vector<2x1024xf32>,
    %c0_3 = arith.constant 0 : index
    %c0_4 = arith.constant 0 : index
    %2 = vector.load %arg2[%c0_3, %c0_4] : memref<2x1536xf32, #tpu.memory_space<vmem>>, vector<2x1536xf32>
    %c0_5 = arith.constant 0 : index
    %c1024 = arith.constant 1024 : index
    %3 = vector.load %arg4[%c0_5, %c1024] : memref<2x3072xf32, #tpu.memory_space<vmem>>, vector<2x1536xf32>
    tpu.vector_store %arg4[%c0_5, %c1024], %2 {strides = array<i32>} : memref<2x3072xf32, #tpu.memory_space<vmem>>, vector<2x1536xf32>,
    %c0_6 = arith.constant 0 : index
    %c0_7 = arith.constant 0 : index
    %4 = vector.load %arg3[%c0_6, %c0_7] : memref<2x512xf32, #tpu.memory_space<vmem>>, vector<2x512xf32>
    %c0_8 = arith.constant 0 : index
    %c2560 = arith.constant 2560 : index
    %5 = vector.load %arg4[%c0_8, %c2560] : memref<2x3072xf32, #tpu.memory_space<vmem>>, vector<2x512xf32>
    tpu.vector_store %arg4[%c0_8, %c2560], %4 {strides = array<i32>} : memref<2x3072xf32, #tpu.memory_space<vmem>>, vector<2x512xf32>,
    return
  }
  func.func @transform_0(%arg0: i32) -> (i32, i32) {
    %c0_i32 = arith.constant 0 : i32
    %c0_i32_0 = arith.constant 0 : i32
    return %arg0, %c0_i32 : i32, i32
  }
  func.func @transform_1(%arg0: i32) -> (i32, i32) {
    %c0_i32 = arith.constant 0 : i32
    %c0_i32_0 = arith.constant 0 : i32
    return %arg0, %c0_i32 : i32, i32
  }
  func.func @transform_2(%arg0: i32) -> (i32, i32) {
    %c0_i32 = arith.constant 0 : i32
    %c0_i32_0 = arith.constant 0 : i32
    return %arg0, %c0_i32 : i32, i32
  }
  func.func @transform_3(%arg0: i32) -> (i32, i32) {
    %c0_i32 = arith.constant 0 : i32
    %c0_i32_0 = arith.constant 0 : i32
    return %arg0, %c0_i32 : i32, i32
  }
}

</mosaic_0001>

<bundles_post_ra>
// kernel: tpu_custom_call.1
= control target key start
LH: loop header
LB: loop body
LE: loop exit
PB: predicated region body
PF: predicated region fallthrough
CT: control target
= control target key end

     0   :  { %8 = vsyncpa [#allocation3], 0  ;;  %s228_s0 = inlined_call_operand.hbm [shape: f32[2,1024], index: 0, kind: input, shape index: {}]   ;;  %s229_s1 = inlined_call_operand.hbm [shape: f32[2,1536], index: 1, kind: input, shape index: {}]   ;;  %s230_s2 = inlined_call_operand.hbm [shape: f32[2,512], index: 2, kind: input, shape index: {}]   ;;  %s231_s3 = inlined_call_operand.hbm [shape: f32[2,3072], index: 3, kind: output, shape index: {}]  }
   0x1   :  { %9 = vsyncpa [#allocation6], 0  ;;  %s27_s14 = sshll.u32 %s229_s1, 4  ;;  %s28_s14 = int_to_ptr.hbm [resolvable:$true] %s27_s14 }
   0x2   :  { %10 = vsyncpa [#allocation4], 0  ;;  %s192_s15 = smov [#allocation5]   ;;  %s16_s19 = sshll.u32 %s228_s0, 4  ;;  %s17_s19 = int_to_ptr.hbm [resolvable:$true] %s16_s19 }
   0x3   :  { %s29_s16 = sshll.u32 %s192_s15, 4  ;;  %s193_s20 = smov [#allocation2]   ;;  %s30_s16 = int_to_ptr.vmem [resolvable:$true] %s29_s16 }
   0x4   :  { %32 = dma.hbm_to_vmem [thread:$0]  %s28_s14, 384, %s30_s16, [#allocation6]  }
   0x5   :  { %s18_s21 = sshll.u32 %s193_s20, 4  ;;  %s38_s24 = sshll.u32 %s230_s2, 4  ;;  %s19_s21 = int_to_ptr.vmem [resolvable:$true] %s18_s21  ;;  %s39_s24 = int_to_ptr.hbm [resolvable:$true] %s38_s24 }
   0x6   :  { %21 = dma.hbm_to_vmem [thread:$0]  %s17_s19, 256, %s19_s21, [#allocation3]  }
   0x7   :  { %s194_s1 = smov [#allocation7]  }
   0x8   :  { %s40_s25 = sshll.u32 %s194_s1, 4  ;;  %s41_s25 = int_to_ptr.vmem [resolvable:$true] %s40_s25 }
   0x9   :  { %43 = dma.hbm_to_vmem [thread:$0]  %s39_s24, 128, %s41_s25, [#allocation6]  }
   0xa   :  { %186 = dma.done.wait [#allocation3], 256  }
   0xb   :  { %187 = vsyncadd [#allocation3], 4294967040 }
   0xc   :  { %188 = dma.done.wait [#allocation6], 512  }
   0xd   :  { %189 = vsyncadd [#allocation6], 4294966784  ;;  %v56_v0 = vld [vmem:[#allocation2] sm:$0xff]  ;;  %v57_v1 = vld [vmem:[#allocation2 + $0x8] sm:$0xff]  ;;  %s195_s0 = smov [#allocation8]   ;;  %s75_s28 = sshll.u32 %s231_s3, 4  ;;  %s76_s28 = int_to_ptr.hbm [resolvable:$true] %s75_s28 }
   0xe   :  { %v60_v2 = vld [vmem:[#allocation5] sm:$0xff]  ;;  %58 = vst [vmem:[#allocation8] sm:$0xff] %v56_v0  ;;  %v61_v3 = vld [vmem:[#allocation5 + $0x8] sm:$0xff]  ;;  %s73_s26 = sshll.u32 %s195_s0, 4  ;;  %v62_v4 = vld [vmem:[#allocation5 + $0x10] sm:$0xff]  ;;  %s74_s26 = int_to_ptr.vmem [resolvable:$true] %s73_s26 }
   0xf   :  { %59 = vst [vmem:[#allocation8 + $0x8] sm:$0xff] %v57_v1  ;;  %v66_v5 = vld [vmem:[#allocation7] sm:$0xff] }
  0x10   :  { %63 = vst [vmem:[#allocation8 + $0x10] sm:$0xff] %v60_v2 }
  0x11   :  { %64 = vst [vmem:[#allocation8 + $0x18] sm:$0xff] %v61_v3 }
  0x12   :  { %65 = vst [vmem:[#allocation8 + $0x20] sm:$0xff] %v62_v4 }
  0x13   :  { %67 = vst [vmem:[#allocation8 + $0x28] sm:$0xff] %v66_v5 }
  0x14   :  { %78 = dma.vmem_to_hbm [thread:$0]  %s74_s26, 768, %s76_s28, [#allocation4]  }
  0x15   :  { %190 = dma.done.wait [#allocation4], 768  }
  0x16   :  { %191 = vsyncadd [#allocation4], 4294966528 }
  0x17   :  { %83 = vsyncpa [#allocation3], 1 }
  0x18   :  { %84 = vsyncpa [#allocation6], 1 }
  0x19   :  { %85 = vsyncpa [#allocation4], 1 }

</bundles_post_ra>
